<compile_context>
chip_gen: v5e
topology: v5e:2x2
jax: 0.10.0
libtpu: 0.0.40
codegen_flags: <defaults>
</compile_context>

<pallas_src>
import functools
import numpy as np

import jax
import jax.numpy as jnp
from jax import lax
from jax.experimental import pallas as pl
from jax.experimental.pallas import tpu as pltpu


def _round_up(x, m):
    return ((x + m - 1) // m) * m


# ----------------------------------------------------------------------------------
# Fused kernel: QKV projection -> masked softmax attention -> relu -> masked mean
#               -> prediction linear -> soft cross-entropy loss.  One grid step for
#               the whole (small) batch.
# ----------------------------------------------------------------------------------
def fused_leap_mef_kernel(lens_ref,            # (B, 1) int32 valid row counts
                          e_ref,               # (B, L, D) padded local embeddings
                          wqkv_ref, bqkv_ref,  # (D, 3*Hp), (1, 3*Hp)  fused Q|K|V
                          wp_ref, bp_ref,      # (Hp, Rp), (1, Rp)     prediction layer
                          tgt_ref,             # (B, Rp)               soft targets
                          feat_ref,            # out: (B, Hp)
                          loss_ref,            # out: (1, 1)
                          *, h_dim, hp, num_rels):
    B, L, D = e_ref.shape
    lens = lens_ref[...]                                                  # (B, 1) int32
    inv_n = pl.reciprocal(jnp.maximum(lens, 1).astype(jnp.float32), approx=True)  # (B, 1)

    e = e_ref[...]                                                        # (B, L, D)

    # ---- fused Q/K/V projection (single MXU pass) ------------------------------
    e2 = e.reshape(B * L, D)
    qkv2 = jnp.dot(e2, wqkv_ref[...], preferred_element_type=jnp.float32) + bqkv_ref[...]
    qkv = qkv2.reshape(B, L, 3 * hp)                                      # (B, L, 3Hp)

    scale = 1.0 / float(np.sqrt(h_dim))
    q = qkv[:, :, :hp] * scale            # scale the (L, Hp) tensor, not the (L, L) scores
    k = qkv[:, :, hp:2 * hp]
    v = qkv[:, :, 2 * hp:3 * hp]

    # ---- attention scores: contract last dims (no k.T materialization) ---------
    s = jnp.einsum("bqh,bkh->bqk", q, k, preferred_element_type=jnp.float32)  # (B, L, L)

    # finite mask for padded keys (matches softmax over the unpadded local batch)
    key_idx = lax.broadcasted_iota(jnp.int32, s.shape, 2)
    s = jnp.where(key_idx < lens[:, :, None], s, -1e30)

    m = jnp.max(s, axis=2, keepdims=True)
    p = jnp.exp(s - m)
    p = p * pl.reciprocal(jnp.sum(p, axis=2, keepdims=True), approx=True)

    out = jnp.einsum("bqk,bkh->bqh", p, v, preferred_element_type=jnp.float32)  # (B, L, Hp)
    out = jnp.maximum(out, 0.0)                                           # relu

    # ---- mean over the n valid rows (torch.mean(out_local, dim=0)) -------------
    row_idx = lax.broadcasted_iota(jnp.int32, out.shape, 1)
    out = jnp.where(row_idx < lens[:, :, None], out, 0.0)
    feat = jnp.sum(out, axis=1) * inv_n                                   # (B, Hp)
    feat_ref[...] = feat                                                  # lane-dense store

    # ---- layer_prediction + soft_cross_entropy (fused) -------------------------
    pred = jnp.dot(feat, wp_ref[...], preferred_element_type=jnp.float32) + bp_ref[...]
    col = lax.broadcasted_iota(jnp.int32, pred.shape, 1)
    pred = jnp.where(col < num_rels, pred, -1e30)         # exclude lane-padding columns
    pm = jnp.max(pred, axis=1, keepdims=True)
    z = pred - pm
    logp = z - jnp.log(jnp.sum(jnp.exp(z), axis=1, keepdims=True))
    per_ex = jnp.sum(-tgt_ref[...] * logp, axis=1, keepdims=True)         # (B, 1)
    loss_ref[...] = jnp.sum(per_ex, axis=0, keepdims=True) * (1.0 / B)    # (1, 1)


# ----------------------------------------------------------------------------------
# Wrapper: host-side lane-padding of parameters + single pallas_call.
# ----------------------------------------------------------------------------------
def leap_mef_forward(lens, E, params, targets_sorted):
    B, L, D = E.shape
    H = params["Wq"].shape[1]
    R = params["Wp"].shape[1]
    Hp = _round_up(max(H, 128), 128)
    Rp = _round_up(max(R, 128), 128)

    def pad_cols(w, new_cols):
        return jnp.pad(w, ((0, 0), (0, new_cols - w.shape[1])))

    # Fused, lane-padded weights. Zero padding keeps the math exact:
    #  - extra q/k columns contribute 0 to the scores
    #  - extra v columns give 0 outputs -> 0 feature columns
    #  - extra Wp rows multiply those 0 feature columns
    Wqkv = jnp.concatenate([pad_cols(params["Wq"], Hp),
                            pad_cols(params["Wk"], Hp),
                            pad_cols(params["Wv"], Hp)], axis=1)          # (D, 3Hp)
    bqkv = jnp.concatenate([pad_cols(params["bq"], Hp),
                            pad_cols(params["bk"], Hp),
                            pad_cols(params["bv"], Hp)], axis=1)          # (1, 3Hp)
    Wp = jnp.pad(params["Wp"], ((0, Hp - H), (0, Rp - R)))                # (Hp, Rp)
    bp = pad_cols(params["bp"], Rp)                                       # (1, Rp)
    tgt = pad_cols(targets_sorted, Rp)                                    # (B, Rp)
    lens2d = lens.reshape(B, 1).astype(jnp.int32)

    feat_pad, loss = pl.pallas_call(
        functools.partial(fused_leap_mef_kernel, h_dim=H, hp=Hp, num_rels=R),
        out_shape=(jax.ShapeDtypeStruct((B, Hp), jnp.float32),
                   jax.ShapeDtypeStruct((1, 1), jnp.float32)),
        grid=(1,),
        in_specs=[
            pl.BlockSpec((B, 1), lambda i: (0, 0)),
            pl.BlockSpec((B, L, D), lambda i: (0, 0, 0)),
            pl.BlockSpec((D, 3 * Hp), lambda i: (0, 0)),
            pl.BlockSpec((1, 3 * Hp), lambda i: (0, 0)),
            pl.BlockSpec((Hp, Rp), lambda i: (0, 0)),
            pl.BlockSpec((1, Rp), lambda i: (0, 0)),
            pl.BlockSpec((B, Rp), lambda i: (0, 0)),
        ],
        out_specs=(pl.BlockSpec((B, Hp), lambda i: (0, 0)),
                   pl.BlockSpec((1, 1), lambda i: (0, 0))),
        compiler_params=pltpu.CompilerParams(dimension_semantics=("arbitrary",)),
    )(lens2d, E, Wqkv, bqkv, Wp, bp, tgt)

    return loss[0, 0], feat_pad[:, :H]


# ----------------------------------------------------------------------------------
# Host-side glue: the data-dependent gather from daily_embed_dict (__get_pred_embeds
# branching / torch.cat logic) with concrete time ids.
# TODO(synk): the dict-keyed, variable-length gather itself stays host-side; the
#             kernel consumes the padded (B, L_max, llm_dim) tensor + valid lengths.
# ----------------------------------------------------------------------------------
def gather_local_embeddings(t, daily_embed_dict, seq_len, llm_dim):
    if t == 0:
        return np.zeros((10, llm_dim), np.float32)
    if 0 < t < seq_len:
        days = range(0, t)
    elif t == 1096:
        days = range(783 - seq_len, 783)
    elif 1096 < t < 1096 + seq_len:
        days = range(1096, t)
    else:
        days = range(t - seq_len, t)
    return np.concatenate([daily_embed_dict[j] for j in days], axis=0)


# ----------------------------------------------------------------------------------
# Pure-JAX reference for validation.
# ----------------------------------------------------------------------------------
def reference_forward(lens, E, params, targets_sorted):
    feats = []
    for b in range(E.shape[0]):
        n = int(lens[b])
        e = E[b, :n]
        q = e @ params["Wq"] + params["bq"][0]
        k = e @ params["Wk"] + params["bk"][0]
        v = e @ params["Wv"] + params["bv"][0]
        s = (q @ k.T) / np.sqrt(params["Wq"].shape[1])
        p = jax.nn.softmax(s, axis=1)
        out = jnp.maximum(p @ v, 0.0)
        feats.append(out.mean(axis=0))
    feat = jnp.stack(feats)
    pred = feat @ params["Wp"] + params["bp"][0]
    logp = jax.nn.log_softmax(pred, axis=-1)
    return jnp.mean(jnp.sum(-targets_sorted * logp, axis=1)), feat


if __name__ == "__main__":
    # Small, forward-consistent shapes.
    h_dim, llm_dim, num_rels, seq_len = 16, 32, 8, 4
    rows_per_day = 2
    B = 4

    key = jax.random.PRNGKey(0)
    keys = jax.random.split(key, 12)

    # Deterministic "daily_embed_dict": days 0..9, each (rows_per_day, llm_dim).
    daily_embed_dict = {
        j: np.asarray(jax.random.normal(jax.random.fold_in(keys[0], j),
                                        (rows_per_day, llm_dim), jnp.float32))
        for j in range(10)
    }

    # Deterministic parameters (nn.Linear weights stored pre-transposed as (in, out)).
    params = {
        "Wq": jax.random.normal(keys[1], (llm_dim, h_dim), jnp.float32) * 0.1,
        "bq": jax.random.normal(keys[2], (1, h_dim), jnp.float32) * 0.01,
        "Wk": jax.random.normal(keys[3], (llm_dim, h_dim), jnp.float32) * 0.1,
        "bk": jax.random.normal(keys[4], (1, h_dim), jnp.float32) * 0.01,
        "Wv": jax.random.normal(keys[5], (llm_dim, h_dim), jnp.float32) * 0.1,
        "bv": jax.random.normal(keys[6], (1, h_dim), jnp.float32) * 0.01,
        "Wp": jax.random.normal(keys[7], (h_dim, num_rels), jnp.float32) * 0.1,
        "bp": jax.random.normal(keys[8], (1, num_rels), jnp.float32) * 0.01,
    }

    # Inputs: t_list of time ids, soft targets true_prob_r (rows sum to 1).
    t_list = np.array([2, 6, 10, 3], dtype=np.int64)
    true_prob_r = jax.nn.softmax(
        jax.random.normal(keys[9], (B, num_rels), jnp.float32), axis=-1)

    # t_list.sort(0, descending=True) -> sorted_t, idx; loss uses true_prob_r[idx].
    idx = np.argsort(-t_list, kind="stable")
    sorted_t = t_list[idx]
    targets_sorted = true_prob_r[jnp.asarray(idx)]

    # Build / pad the per-timestep local embedding batches (host glue).
    locals_np = [gather_local_embeddings(int(t), daily_embed_dict, seq_len, llm_dim)
                 for t in sorted_t]
    lens_np = np.array([e.shape[0] for e in locals_np], dtype=np.int32)
    L_max = int(max(8, ((lens_np.max() + 7) // 8) * 8))
    E_np = np.zeros((B, L_max, llm_dim), np.float32)
    for b, e in enumerate(locals_np):
        E_np[b, : e.shape[0]] = e

    lens = jnp.asarray(lens_np)
    E = jnp.asarray(E_np)

    loss, feat = leap_mef_forward(lens, E, params, targets_sorted)
    loss = jax.block_until_ready(loss)

    ref_loss, ref_feat = reference_forward(lens_np, E, params, targets_sorted)
    # Tolerances account for pl.reciprocal(approx=True) in the softmax / mean path.
    np.testing.assert_allclose(np.asarray(feat), np.asarray(ref_feat), rtol=1e-2, atol=1e-3)
    np.testing.assert_allclose(float(loss), float(ref_loss), rtol=1e-2, atol=1e-3)

    print("KERNEL_OK")
</pallas_src>

<mosaic_0001>
module attributes {stable_mosaic.version = 11 : i64} {
  func.func @fused_leap_mef_kernel(%arg0: i32, %arg1: memref<4x1xi32, #tpu.memory_space<vmem>>, %arg2: memref<4x8x32xf32, #tpu.memory_space<vmem>>, %arg3: memref<32x384xf32, #tpu.memory_space<vmem>>, %arg4: memref<1x384xf32, #tpu.memory_space<vmem>>, %arg5: memref<128x128xf32, #tpu.memory_space<vmem>>, %arg6: memref<1x128xf32, #tpu.memory_space<vmem>>, %arg7: memref<4x128xf32, #tpu.memory_space<vmem>>, %arg8: memref<4x128xf32, #tpu.memory_space<vmem>>, %arg9: memref<1x1xf32, #tpu.memory_space<vmem>>) attributes {dimension_semantics = [#tpu.dimension_semantics<arbitrary>], iteration_bounds = array<i64: 1>, scalar_prefetch = 0 : i64, scratch_operands = 0 : i64, tpu.core_type = #tpu.core_type<tc>, window_params = [{pipeline_mode = #tpu.pipeline_mode<synchronous>, transform_indices = @transform_0, window_bounds = array<i64: 4, 1>}, {pipeline_mode = #tpu.pipeline_mode<synchronous>, transform_indices = @transform_1, window_bounds = array<i64: 4, 8, 32>}, {pipeline_mode = #tpu.pipeline_mode<synchronous>, transform_indices = @transform_2, window_bounds = array<i64: 32, 384>}, {pipeline_mode = #tpu.pipeline_mode<synchronous>, transform_indices = @transform_3, window_bounds = array<i64: 1, 384>}, {pipeline_mode = #tpu.pipeline_mode<synchronous>, transform_indices = @transform_4, window_bounds = array<i64: 128, 128>}, {pipeline_mode = #tpu.pipeline_mode<synchronous>, transform_indices = @transform_5, window_bounds = array<i64: 1, 128>}, {pipeline_mode = #tpu.pipeline_mode<synchronous>, transform_indices = @transform_6, window_bounds = array<i64: 4, 128>}, {pipeline_mode = #tpu.pipeline_mode<synchronous>, transform_indices = @transform_7, window_bounds = array<i64: 4, 128>}, {pipeline_mode = #tpu.pipeline_mode<synchronous>, transform_indices = @transform_8, window_bounds = array<i64: 1, 1>}]} {
    %c0 = arith.constant 0 : index
    %c0_0 = arith.constant 0 : index
    %0 = vector.load %arg1[%c0, %c0_0] : memref<4x1xi32, #tpu.memory_space<vmem>>, vector<4x1xi32>
    %c1_i32 = arith.constant 1 : i32
    %1 = vector.broadcast %c1_i32 : i32 to vector<4x1xi32>
    %2 = arith.maxsi %0, %1 : vector<4x1xi32>
    %3 = arith.sitofp %2 : vector<4x1xi32> to vector<4x1xf32>
    %4 = tpu.reciprocal %3 {approx = true} : vector<4x1xf32> -> vector<4x1xf32>
    %c0_1 = arith.constant 0 : index
    %c0_2 = arith.constant 0 : index
    %c0_3 = arith.constant 0 : index
    %5 = vector.load %arg2[%c0_1, %c0_2, %c0_3] : memref<4x8x32xf32, #tpu.memory_space<vmem>>, vector<4x8x32xf32>
    %6 = vector.shape_cast %5 : vector<4x8x32xf32> to vector<32x32xf32>
    %c0_4 = arith.constant 0 : index
    %c0_5 = arith.constant 0 : index
    %7 = vector.load %arg3[%c0_4, %c0_5] : memref<32x384xf32, #tpu.memory_space<vmem>>, vector<32x384xf32>
    %cst = arith.constant dense<0.000000e+00> : vector<32x384xf32>
    %8 = tpu.matmul %6, %7, %cst {dimension_numbers = #tpu.dot_dimension_numbers<[1], [0], [0], [1], [0, 0, 1, 1], [], []>} : vector<32x32xf32>, vector<32x384xf32>, vector<32x384xf32> -> vector<32x384xf32>
    %c0_6 = arith.constant 0 : index
    %c0_7 = arith.constant 0 : index
    %9 = vector.load %arg4[%c0_6, %c0_7] : memref<1x384xf32, #tpu.memory_space<vmem>>, vector<1x384xf32>
    %10 = vector.broadcast %9 : vector<1x384xf32> to vector<32x384xf32>
    %11 = arith.addf %8, %10 : vector<32x384xf32>
    %12 = vector.shape_cast %11 : vector<32x384xf32> to vector<4x8x384xf32>
    %13 = vector.extract_strided_slice %12 {offsets = [0, 0, 0], sizes = [4, 8, 128], strides = [1, 1, 1]} : vector<4x8x384xf32> to vector<4x8x128xf32>
    %cst_8 = arith.constant 2.500000e-01 : f32
    %14 = vector.broadcast %cst_8 : f32 to vector<4x8x128xf32>
    %15 = arith.mulf %13, %14 : vector<4x8x128xf32>
    %16 = vector.extract_strided_slice %12 {offsets = [0, 0, 128], sizes = [4, 8, 128], strides = [1, 1, 1]} : vector<4x8x384xf32> to vector<4x8x128xf32>
    %17 = vector.extract_strided_slice %12 {offsets = [0, 0, 256], sizes = [4, 8, 128], strides = [1, 1, 1]} : vector<4x8x384xf32> to vector<4x8x128xf32>
    "tpu.trace_start"() <{level = 10 : i32, message = "bqh,bkh->bqk"}> : () -> ()
    %cst_9 = arith.constant dense<0.000000e+00> : vector<4x8x8xf32>
    %18 = tpu.matmul %15, %16, %cst_9 {dimension_numbers = #tpu.dot_dimension_numbers<[2], [2], [1], [1], [0, 0, 0, 1, 1, 1], [0], [0]>} : vector<4x8x128xf32>, vector<4x8x128xf32>, vector<4x8x8xf32> -> vector<4x8x8xf32>
    "tpu.trace_stop"() : () -> ()
    %19 = tpu.iota {dimensions = array<i32: 2>} : vector<4x8x8xi32>
    %20 = vector.shape_cast %0 : vector<4x1xi32> to vector<4x1x1xi32>
    %21 = vector.broadcast %20 : vector<4x1x1xi32> to vector<4x8x8xi32>
    %22 = arith.cmpi slt, %19, %21 : vector<4x8x8xi32>
    %cst_10 = arith.constant -1.000000e+30 : f32
    %23 = vector.broadcast %cst_10 : f32 to vector<4x8x8xf32>
    %24 = arith.select %22, %18, %23 : vector<4x8x8xi1>, vector<4x8x8xf32>
    %cst_11 = arith.constant dense<0xFF800000> : vector<4x8xf32>
    %25 = vector.multi_reduction <maximumf>, %24, %cst_11 [2] : vector<4x8x8xf32> to vector<4x8xf32>
    %26 = vector.shape_cast %25 : vector<4x8xf32> to vector<4x8x1xf32>
    %27 = vector.broadcast %26 : vector<4x8x1xf32> to vector<4x8x8xf32>
    %28 = arith.subf %24, %27 : vector<4x8x8xf32>
    %29 = math.exp %28 : vector<4x8x8xf32>
    %cst_12 = arith.constant dense<0.000000e+00> : vector<4x8xf32>
    %30 = vector.multi_reduction <add>, %29, %cst_12 [2] : vector<4x8x8xf32> to vector<4x8xf32>
    %31 = vector.shape_cast %30 : vector<4x8xf32> to vector<4x8x1xf32>
    %32 = tpu.reciprocal %31 {approx = true} : vector<4x8x1xf32> -> vector<4x8x1xf32>
    %33 = vector.broadcast %32 : vector<4x8x1xf32> to vector<4x8x8xf32>
    %34 = arith.mulf %29, %33 : vector<4x8x8xf32>
    "tpu.trace_start"() <{level = 10 : i32, message = "bqk,bkh->bqh"}> : () -> ()
    %cst_13 = arith.constant dense<0.000000e+00> : vector<4x8x128xf32>
    %35 = tpu.matmul %34, %17, %cst_13 {dimension_numbers = #tpu.dot_dimension_numbers<[2], [1], [1], [2], [0, 0, 0, 1, 1, 2], [0], [0]>} : vector<4x8x8xf32>, vector<4x8x128xf32>, vector<4x8x128xf32> -> vector<4x8x128xf32>
    "tpu.trace_stop"() : () -> ()
    %cst_14 = arith.constant 0.000000e+00 : f32
    %36 = vector.broadcast %cst_14 : f32 to vector<4x8x128xf32>
    %37 = arith.maximumf %35, %36 : vector<4x8x128xf32>
    %38 = tpu.iota {dimensions = array<i32: 1>} : vector<4x8x128xi32>
    %39 = vector.shape_cast %0 : vector<4x1xi32> to vector<4x1x1xi32>
    %40 = vector.broadcast %39 : vector<4x1x1xi32> to vector<4x8x128xi32>
    %41 = arith.cmpi slt, %38, %40 : vector<4x8x128xi32>
    %cst_15 = arith.constant 0.000000e+00 : f32
    %42 = vector.broadcast %cst_15 : f32 to vector<4x8x128xf32>
    %43 = arith.select %41, %37, %42 : vector<4x8x128xi1>, vector<4x8x128xf32>
    %cst_16 = arith.constant dense<0.000000e+00> : vector<4x128xf32>
    %44 = vector.multi_reduction <add>, %43, %cst_16 [1] : vector<4x8x128xf32> to vector<4x128xf32>
    %45 = vector.broadcast %4 : vector<4x1xf32> to vector<4x128xf32>
    %46 = arith.mulf %44, %45 : vector<4x128xf32>
    %c0_17 = arith.constant 0 : index
    %c0_18 = arith.constant 0 : index
    %47 = vector.load %arg8[%c0_17, %c0_18] : memref<4x128xf32, #tpu.memory_space<vmem>>, vector<4x128xf32>
    tpu.vector_store %arg8[%c0_17, %c0_18], %46 {strides = array<i32>} : memref<4x128xf32, #tpu.memory_space<vmem>>, vector<4x128xf32>,
    %c0_19 = arith.constant 0 : index
    %c0_20 = arith.constant 0 : index
    %48 = vector.load %arg5[%c0_19, %c0_20] : memref<128x128xf32, #tpu.memory_space<vmem>>, vector<128x128xf32>
    %cst_21 = arith.constant dense<0.000000e+00> : vector<4x128xf32>
    %49 = tpu.matmul %46, %48, %cst_21 {dimension_numbers = #tpu.dot_dimension_numbers<[1], [0], [0], [1], [0, 0, 1, 1], [], []>} : vector<4x128xf32>, vector<128x128xf32>, vector<4x128xf32> -> vector<4x128xf32>
    %c0_22 = arith.constant 0 : index
    %c0_23 = arith.constant 0 : index
    %50 = vector.load %arg6[%c0_22, %c0_23] : memref<1x128xf32, #tpu.memory_space<vmem>>, vector<1x128xf32>
    %51 = vector.broadcast %50 : vector<1x128xf32> to vector<4x128xf32>
    %52 = arith.addf %49, %51 : vector<4x128xf32>
    %53 = tpu.iota {dimensions = array<i32: 1>} : vector<4x128xi32>
    %c8_i32 = arith.constant 8 : i32
    %54 = vector.broadcast %c8_i32 : i32 to vector<4x128xi32>
    %55 = arith.cmpi slt, %53, %54 : vector<4x128xi32>
    %cst_24 = arith.constant -1.000000e+30 : f32
    %56 = vector.broadcast %cst_24 : f32 to vector<4x128xf32>
    %57 = arith.select %55, %52, %56 : vector<4x128xi1>, vector<4x128xf32>
    %cst_25 = arith.constant dense<0xFF800000> : vector<4xf32>
    %58 = vector.multi_reduction <maximumf>, %57, %cst_25 [1] : vector<4x128xf32> to vector<4xf32>
    %59 = vector.shape_cast %58 : vector<4xf32> to vector<4x1xf32>
    %60 = vector.broadcast %59 : vector<4x1xf32> to vector<4x128xf32>
    %61 = arith.subf %57, %60 : vector<4x128xf32>
    %62 = math.exp %61 : vector<4x128xf32>
    %cst_26 = arith.constant dense<0.000000e+00> : vector<4xf32>
    %63 = vector.multi_reduction <add>, %62, %cst_26 [1] : vector<4x128xf32> to vector<4xf32>
    %64 = vector.shape_cast %63 : vector<4xf32> to vector<4x1xf32>
    %65 = math.log %64 : vector<4x1xf32>
    %66 = vector.broadcast %65 : vector<4x1xf32> to vector<4x128xf32>
    %67 = arith.subf %61, %66 : vector<4x128xf32>
    %c0_27 = arith.constant 0 : index
    %c0_28 = arith.constant 0 : index
    %68 = vector.load %arg7[%c0_27, %c0_28] : memref<4x128xf32, #tpu.memory_space<vmem>>, vector<4x128xf32>
    %cst_29 = arith.constant 0.000000e+00 : f32
    %69 = vector.broadcast %cst_29 : f32 to vector<4x128xf32>
    %70 = arith.subf %69, %68 : vector<4x128xf32>
    %71 = arith.mulf %70, %67 : vector<4x128xf32>
    %cst_30 = arith.constant dense<0.000000e+00> : vector<4xf32>
    %72 = vector.multi_reduction <add>, %71, %cst_30 [1] : vector<4x128xf32> to vector<4xf32>
    %73 = vector.shape_cast %72 : vector<4xf32> to vector<4x1xf32>
    %cst_31 = arith.constant dense<0.000000e+00> : vector<1xf32>
    %74 = vector.multi_reduction <add>, %73, %cst_31 [0] : vector<4x1xf32> to vector<1xf32>
    %75 = vector.shape_cast %74 : vector<1xf32> to vector<1x1xf32>
    %cst_32 = arith.constant 2.500000e-01 : f32
    %76 = vector.broadcast %cst_32 : f32 to vector<1x1xf32>
    %77 = arith.mulf %75, %76 : vector<1x1xf32>
    %c0_33 = arith.constant 0 : index
    %c0_34 = arith.constant 0 : index
    %78 = vector.load %arg9[%c0_33, %c0_34] : memref<1x1xf32, #tpu.memory_space<vmem>>, vector<1x1xf32>
    tpu.vector_store %arg9[%c0_33, %c0_34], %77 {strides = array<i32>} : memref<1x1xf32, #tpu.memory_space<vmem>>, vector<1x1xf32>,
    return
  }
  func.func @transform_0(%arg0: i32) -> (i32, i32) {
    %c0_i32 = arith.constant 0 : i32
    %c0_i32_0 = arith.constant 0 : i32
    %c0_i32_1 = arith.constant 0 : i32
    return %c0_i32, %c0_i32_0 : i32, i32
  }
  func.func @transform_1(%arg0: i32) -> (i32, i32, i32) {
    %c0_i32 = arith.constant 0 : i32
    %c0_i32_0 = arith.constant 0 : i32
    %c0_i32_1 = arith.constant 0 : i32
    %c0_i32_2 = arith.constant 0 : i32
    return %c0_i32, %c0_i32_0, %c0_i32_1 : i32, i32, i32
  }
  func.func @transform_2(%arg0: i32) -> (i32, i32) {
    %c0_i32 = arith.constant 0 : i32
    %c0_i32_0 = arith.constant 0 : i32
    %c0_i32_1 = arith.constant 0 : i32
    return %c0_i32, %c0_i32_0 : i32, i32
  }
  func.func @transform_3(%arg0: i32) -> (i32, i32) {
    %c0_i32 = arith.constant 0 : i32
    %c0_i32_0 = arith.constant 0 : i32
    %c0_i32_1 = arith.constant 0 : i32
    return %c0_i32, %c0_i32_0 : i32, i32
  }
  func.func @transform_4(%arg0: i32) -> (i32, i32) {
    %c0_i32 = arith.constant 0 : i32
    %c0_i32_0 = arith.constant 0 : i32
    %c0_i32_1 = arith.constant 0 : i32
    return %c0_i32, %c0_i32_0 : i32, i32
  }
  func.func @transform_5(%arg0: i32) -> (i32, i32) {
    %c0_i32 = arith.constant 0 : i32
    %c0_i32_0 = arith.constant 0 : i32
    %c0_i32_1 = arith.constant 0 : i32
    return %c0_i32, %c0_i32_0 : i32, i32
  }
  func.func @transform_6(%arg0: i32) -> (i32, i32) {
    %c0_i32 = arith.constant 0 : i32
    %c0_i32_0 = arith.constant 0 : i32
    %c0_i32_1 = arith.constant 0 : i32
    return %c0_i32, %c0_i32_0 : i32, i32
  }
  func.func @transform_7(%arg0: i32) -> (i32, i32) {
    %c0_i32 = arith.constant 0 : i32
    %c0_i32_0 = arith.constant 0 : i32
    %c0_i32_1 = arith.constant 0 : i32
    return %c0_i32, %c0_i32_0 : i32, i32
  }
  func.func @transform_8(%arg0: i32) -> (i32, i32) {
    %c0_i32 = arith.constant 0 : i32
    %c0_i32_0 = arith.constant 0 : i32
    %c0_i32_1 = arith.constant 0 : i32
    return %c0_i32, %c0_i32_0 : i32, i32
  }
}

</mosaic_0001>

<bundles_post_ra>
// kernel: tpu_custom_call.1
= control target key start
LH: loop header
LB: loop body
LE: loop exit
PB: predicated region body
PF: predicated region fallthrough
CT: control target
= control target key end

     0   :  { %14 = vsyncpa [#allocation3], 0  ;;  %s962_s0 = inlined_call_operand.vmem [shape: s32[4,1], index: 0, kind: input, shape index: {}]   ;;  %s963_s1 = inlined_call_operand.hbm [shape: f32[4,8,32], index: 1, kind: input, shape index: {}]   ;;  %s964_s2 = inlined_call_operand.hbm [shape: f32[32,384], index: 2, kind: input, shape index: {}]   ;;  %s965_s3 = inlined_call_operand.vmem [shape: f32[1,384], index: 3, kind: input, shape index: {}]   ;;  %s966_s4 = inlined_call_operand.hbm [shape: f32[128,128], index: 4, kind: input, shape index: {}]   ;;  %s967_s5 = inlined_call_operand.vmem [shape: f32[1,128], index: 5, kind: input, shape index: {}]   ;;  %s968_s6 = inlined_call_operand.vmem [shape: f32[4,128], index: 6, kind: input, shape index: {}]   ;;  %s969_s7 = inlined_call_operand.hbm [shape: f32[4,128], index: 7, kind: output, shape index: {0}]   ;;  %s970_s8 = inlined_call_operand.hbm [shape: f32[1,1], index: 8, kind: output, shape index: {1}]  }
   0x1   :  { %15 = vsyncpa [#allocation6], 0 }
   0x2   :  { %16 = vsyncpa [#allocation4], 0  ;;  %s37_s29 = sshll.u32 %s964_s2, 4  ;;  %s38_s29 = int_to_ptr.hbm [resolvable:$true] %s37_s29 }
   0x3   :  { %17 = vsyncpa [#allocation10], 0  ;;  %s809_s30 = smov [#allocation5]   ;;  %s24_s12 = sshll.u32 %s963_s1, 4  ;;  %s25_s12 = int_to_ptr.hbm [resolvable:$true] %s24_s12 }
   0x4   :  { %s39_s9 = sshll.u32 %s809_s30, 4  ;;  %s810_s13 = smov 384   ;;  %s40_s9 = int_to_ptr.vmem [resolvable:$true] %s39_s9 }
   0x5   :  { %s811_s14 = smov 24   ;;  %s812_s15 = smov [#allocation2]  }
   0x6   :  { %45 = dma.hbm_to_vmem [thread:$0]  %s38_s29, 1536, %s40_s9, [#allocation6], %s810_s13, %s810_s13, %s811_s14  }
   0x7   :  { %s26_s16 = sshll.u32 %s812_s15, 4  ;;  %s813_s17 = smov 128   ;;  %s27_s16 = int_to_ptr.vmem [resolvable:$true] %s26_s16 }
   0x8   :  { %s814_s18 = smov 8   ;;  %s52_s20 = sshll.u32 %s966_s4, 4  ;;  %s53_s20 = int_to_ptr.hbm [resolvable:$true] %s52_s20 }
   0x9   :  { %32 = dma.hbm_to_vmem [thread:$0]  %s25_s12, 512, %s27_s16, [#allocation3], %s813_s17, %s813_s17, %s814_s18  }
   0xa   :  { %s815_s21 = smov [#allocation7]  }
   0xb   :  { %s54_s22 = sshll.u32 %s815_s21, 4  ;;  %s55_s22 = int_to_ptr.vmem [resolvable:$true] %s54_s22 }
   0xc   :  { %60 = dma.hbm_to_vmem [thread:$0]  %s53_s20, 2048, %s55_s22, [#allocation6], %s813_s17, %s813_s17, %s814_s18  }
   0xd   :  { %801 = dma.done.wait [#allocation3], 512  }
   0xe   :  { %802 = vsyncadd [#allocation3], 4294966784 }
   0xf   :  { %803 = dma.done.wait [#allocation6], 3584  }
  0x10   :  { %804 = vsyncadd [#allocation6], 4294963712  ;;  %v96_v0 = vld [vmem:[#allocation5 + $0x50] sm:$0xff]  ;;  %v95_v1 = vld [vmem:[#allocation5 + $0x48] sm:$0xff]  ;;  %vm106_vm0 = vcmask 261120   ;;  %v816_v18 = vmov 0   ;;  %v290_v53 = vlaneseq }
  0x11   :  { %v93_v2 = vld [vmem:[#allocation5 + $0x38] sm:$0xff]  ;;  %160 = vmatpush.msra.mxu1 %v96_v0  ;;  %131 = vmatpush.msra.mxu0 %v95_v1  ;;  %v92_v3 = vld [vmem:[#allocation5 + $0x30] sm:$0xff]  ;;  %v90_v4 = vld [vmem:[#allocation5 + $0x20] sm:$0xff]  ;;  %vm319_vm4 = vcmask 64512   ;;  %vm514_vm9 = vcmask 1041409   ;;  %vm517_vm12 = vcmask 1042434  }
  0x12   :  { %v89_v5 = vld [vmem:[#allocation5 + $0x18] sm:$0xff]  ;;  %v87_v6 = vld [vmem:[#allocation5 + $0x8] sm:$0xff]  ;;  %v86_v7 = vld [vmem:[#allocation5] sm:$0xff]  ;;  %655 = vset.pattern.permute.xlu0 %v816_v18  ;;  %656 = vset.pattern.permute.xlu1 %v816_v18  ;;  %v897_v54 = vshrl.u32 %v290_v53, 7  ;;  %v907_v61 = vand.u32 127, %v290_v53  ;;  %vm520_vm13 = vcmask 1043459  }
  0x13   :  { %161 = vmatpush.msra.mxu1 %v93_v2  ;;  %132 = vmatpush.msra.mxu0 %v92_v3  ;;  %v97_v8 = vld [vmem:[#allocation5 + $0x58] sm:$0xff]  ;;  %v82_v9 = vld [vmem:[#allocation2] sm:$0xff]  ;;  %v91_v11 = vld [vmem:[#allocation5 + $0x28] sm:$0xff]  ;;  %vm566_vm15 = vcmask 1043456   ;;  %s602_s28 = sshll.u32 %s969_s7, 4  ;;  %s817_s29 = smov [#allocation8]   ;;  %s603_s28 = int_to_ptr.hbm [resolvable:$true] %s602_s28 }
  0x14   :  { %189 = vmatpush.msra.mxu2 %v97_v8  ;;  %v94_v10 = vld [vmem:[#allocation5 + $0x40] sm:$0xff]  ;;  %v88_v12 = vld [vmem:[#allocation5 + $0x10] sm:$0xff]  ;;  %v83_v13 = vld [vmem:[#allocation2 + $0x8] sm:$0xff]  ;;  %657 = vset.pattern.permute.xlu2 %v816_v18  ;;  %vm564_vm14 = vcmp.lt.s32.totalorder %v907_v61, 8  ;;  %s600_s30 = sshll.u32 %s817_s29, 4  ;;  %s613_s12 = sshll.u32 %s970_s8, 4  ;;  %s601_s30 = int_to_ptr.vmem [resolvable:$true] %s600_s30  ;;  %s614_s12 = int_to_ptr.hbm [resolvable:$true] %s613_s12 }
  0x15   :  { %162 = vmatpush.msra.mxu1 %v90_v4  ;;  %133 = vmatpush.msra.mxu0 %v89_v5  ;;  %v84_v14 = vld [vmem:[#allocation2 + $0x10] sm:$0xff]  ;;  %v85_v15 = vld [vmem:[#allocation2 + $0x18] sm:$0xff]  ;;  %v888_v16 = vld [vmem:[%s962_s0] sm:$0xf] }
  0x16   :  { %190 = vmatpush.msra.mxu2 %v94_v10  ;;  %v295_v17 = vperm.slane %v888_v16, 0  ;;  %v292_v19 = vrot.slane %v888_v16, 1  ;;  %v98_v21 = vld [vmem:[%s965_s3] sm:$0x7]  ;;  %v294_v22 = vrot.slane %v888_v16, 3  ;;  %v293_v26 = vrot.slane %v888_v16, 2 }
  0x17   :  { %163 = vmatpush.msra.mxu1 %v87_v6  ;;  %134 = vmatpush.msra.mxu0 %v86_v7  ;;  %v101_v24 = vperm.slane %v98_v21, 1  ;;  %v100_v25 = vperm.slane %v98_v21, 0  ;;  %v102_v44 = vperm.slane %v98_v21, 2  ;;  %vm78_vm8 = vcmp.gt.s32.totalorder %v888_v16, 1  ;;  %v534_v53 = vld [vmem:[#allocation7 + $0x50] sm:$0xff] }
  0x18   :  { %633 = vmatmul.msk.f32.vlgmr.msra.gmra.mxu1 %vm106_vm0, %v82_v9  ;;  %629 = vmatmul.msk.f32.vlgmr.msra.gmra.mxu0 %vm106_vm0, %v82_v9  ;;  %v296_v20 = vperm.slane %v292_v19, 0  ;;  %v298_v23 = vperm.slane %v294_v22, 0  ;;  %v297_v29 = vperm.slane %v293_v26, 0 }
  0x19   :  { %191 = vmatpush.msra.mxu2 %v91_v11  ;;  %300 = vperm.xlu0 %655, %v295_v17  }
  0x1a   :  { %303 = vperm.xlu1 %656, %v296_v20  }
  0x1b   :  { %192 = vmatpush.msra.mxu2 %v88_v12 }
  0x1c   :  { %637 = vmatmul.msk.f32.vlgmr.msra.gmra.mxu2 %vm106_vm0, %v82_v9 }
  0x20   :  { %634 = vmatmul.msk.f32.gmra.mxu1 %vm106_vm0, %v83_v13  ;;  %630 = vmatmul.msk.f32.gmra.mxu0 %vm106_vm0, %v83_v13 }
  0x21   :  { %309 = vperm.xlu0 %655, %v298_v23  }
  0x22   :  { %306 = vperm.xlu1 %656, %v297_v29  }
  0x24   :  { %638 = vmatmul.msk.f32.gmra.mxu2 %vm106_vm0, %v83_v13 }
  0x28   :  { %635 = vmatmul.msk.f32.gmra.mxu1 %vm106_vm0, %v84_v14  ;;  %631 = vmatmul.msk.f32.gmra.mxu0 %vm106_vm0, %v84_v14 }
  0x2c   :  { %639 = vmatmul.msk.f32.gmra.mxu2 %vm106_vm0, %v84_v14 }
  0x30   :  { %636 = vmatmul.msk.f32.gmra.mxu1 %vm106_vm0, %v85_v15  ;;  %632 = vmatmul.msk.f32.gmra.mxu0 %vm106_vm0, %v85_v15 }
  0x34   :  { %640 = vmatmul.msk.f32.gmra.mxu2 %vm106_vm0, %v85_v15  ;;  %vm593_vm0 = vcmask 0  }
  0x8b   :  { %v899_v55 = vpop.permute.xlu0 %300 }
  0x8c   :  { %vm462_vm1 = vcmp.lt.s32.totalorder %v897_v54, %v899_v55  ;;  %v903_v58 = vpop.permute.xlu1 %303  ;;  %vm311_vm3 = vcmp.lt.s32.totalorder %v907_v61, %v899_v55 }
  0x8d   :  { %vm463_vm2 = vcmp.lt.s32.totalorder %v897_v54, %v903_v58  ;;  %vm312_vm5 = vcmp.lt.s32.totalorder %v907_v61, %v903_v58 }
  0x93   :  { %v920_v8 = vpop.permute.xlu0 %309 }
  0x94   :  { %v915_v4 = vpop.permute.xlu1 %306  ;;  %vm314_vm7 = vcmp.lt.s32.totalorder %v907_v61, %v920_v8  ;;  %vm465_vm10 = vcmp.lt.s32.totalorder %v897_v54, %v920_v8 }
  0x95   :  { %v165_v27 = vpop.f32.mrf.mxu1  ;;  %v136_v28 = vpop.f32.mrf.mxu0  ;;  %vm313_vm6 = vcmp.lt.s32.totalorder %v907_v61, %v915_v4  ;;  %vm464_vm11 = vcmp.lt.s32.totalorder %v897_v54, %v915_v4  ;;  %v579_v61 = vld [vmem:[%s968_s6] sm:$0xf]  ;;  %s818_s6 = smov [#allocation9]  }
  0x96   :  { %v166_v30 = vadd.f32 %v165_v27, %v101_v24  ;;  %v137_v31 = vadd.f32 %v136_v28, %v100_v25  ;;  %s611_s9 = sshll.u32 %s818_s6, 4  ;;  %s612_s9 = int_to_ptr.vmem [resolvable:$true] %s611_s9 }
  0x98   :  { %v206_v32 = vmul.f32 0.25, %v137_v31  ;;  %225 = vmatpush.xpose.msrb.mxu0 %v166_v30 }
  0x9b   :  { %226 = vmatmul.f32.vlgmr.msrb.gmra.mxu0 %v206_v32 }
  0x9d   :  { %v168_v33 = vpop.f32.mrf.mxu1  ;;  %v139_v34 = vpop.f32.mrf.mxu0 }
  0x9e   :  { %v169_v35 = vadd.f32 %v168_v33, %v101_v24  ;;  %v140_v36 = vadd.f32 %v139_v34, %v100_v25 }
  0x9f   :  { %v194_v38 = vpop.f32.mrf.mxu2 }
  0xa0   :  { %v207_v37 = vmul.f32 0.25, %v140_v36  ;;  %245 = vmatpush.xpose.msrb.mxu1 %v169_v35  ;;  %v195_v49 = vadd.f32 %v194_v38, %v102_v44 }
  0xa3   :  { %246 = vmatmul.f32.vlgmr.msrb.gmra.mxu1 %v207_v37 }
  0xa5   :  { %v171_v39 = vpop.f32.mrf.mxu1  ;;  %v142_v40 = vpop.f32.mrf.mxu0 }
  0xa6   :  { %v172_v41 = vadd.f32 %v171_v39, %v101_v24  ;;  %v143_v42 = vadd.f32 %v142_v40, %v100_v25  ;;  %v79_v39 = vsel %vm78_vm8, %v888_v16, 1  ;;  %v538_v16 = vld [vmem:[#allocation7 + $0x70] sm:$0xff] }
  0xa7   :  { %v197_v45 = vpop.f32.mrf.mxu2  ;;  %v80_v40 = vcvt.s32.f32 %v79_v39 }
  0xa8   :  { %v208_v43 = vmul.f32 0.25, %v143_v42  ;;  %265 = vmatpush.xpose.msrb.mxu2 %v172_v41  ;;  %v198_v46 = vadd.f32 %v197_v45, %v102_v44 }
  0xaa   :  { %405 = vmatpush.msra.mxu0 %v198_v46 }
  0xab   :  { %266 = vmatmul.f32.vlgmr.msrb.gmra.mxu2 %v208_v43 }
  0xad   :  { %v174_v47 = vpop.f32.mrf.mxu1  ;;  %v145_v48 = vpop.f32.mrf.mxu0 }
  0xae   :  { %v146_v50 = vadd.f32 %v145_v48, %v100_v25  ;;  %v175_v51 = vadd.f32 %v174_v47, %v101_v24  ;;  %v539_v48 = vld [vmem:[#allocation7 + $0x78] sm:$0xff] }
  0xaf   :  { %v200_v56 = vpop.f32.mrf.mxu2 }
  0xb0   :  { %v209_v52 = vmul.f32 0.25, %v146_v50  ;;  %285 = vmatpush.xpose.msra.mxu3 %v175_v51  ;;  %v201_v57 = vadd.f32 %v200_v56, %v102_v44  ;;  %v536_v50 = vld [vmem:[#allocation7 + $0x60] sm:$0xff]  ;;  %v535_v51 = vld [vmem:[#allocation7 + $0x58] sm:$0xff] }
  0xb2   :  { %428 = vmatpush.msra.mxu1 %v201_v57 }
  0xb3   :  { %286 = vmatmul.f32.vlgmr.msra.gmra.mxu3 %v209_v52 }
  0xb4   :  { %382 = vmatpush.msrb.mxu3 %v195_v49  ;;  %v537_v49 = vld [vmem:[#allocation7 + $0x68] sm:$0xff] }
  0xb6   :  { %544 = vmatpush.msra.mxu3 %v539_v48 }
  0xb7   :  { %v203_v59 = vpop.f32.mrf.mxu2 }
  0xb8   :  { %v204_v60 = vadd.f32 %v203_v59, %v102_v44  ;;  %545 = vmatpush.msra.mxu3 %v538_v16  ;;  %v533_v59 = vld [vmem:[#allocation7 + $0x48] sm:$0xff] }
  0xba   :  { %451 = vmatpush.msra.mxu2 %v204_v60  ;;  %546 = vmatpush.msra.mxu3 %v537_v49 }
  0xbc   :  { %547 = vmatpush.msra.mxu3 %v536_v50  ;;  %v658_v50 = vld [vmem:[%s967_s5] ss:$0 sm:$0xff] }
  0xbe   :  { %548 = vmatpush.msra.mxu3 %v535_v51 }
  0xc0   :  { %549 = vmatpush.msra.mxu3 %v534_v53 }
  0xc2   :  { %550 = vmatpush.msra.mxu3 %v533_v59 }
 0x118   :  { %v227_v62 = vpop.f32.mrf.mxu0 }
 0x119   :  { %v315_v63 = vsel %vm311_vm3, %v227_v62, -1e+30 }
 0x11a   :  { %v320_v0 = vsel %vm319_vm4, %v315_v63, -inf }
 0x11b   :  { %321 = vmax.xlane.f32.xlu2 %v320_v0  ;;  %v532_v0 = vld [vmem:[#allocation7 + $0x40] sm:$0xff] }
 0x11c   :  { %551 = vmatpush.msra.mxu3 %v532_v0 }
 0x120   :  { %v247_v1 = vpop.f32.mrf.mxu1 }
 0x121   :  { %v316_v2 = vsel %vm312_vm5, %v247_v1, -1e+30 }
 0x122   :  { %v323_v3 = vsel %vm319_vm4, %v316_v2, -inf }
 0x123   :  { %324 = vmax.xlane.f32.xlu0 %v323_v3 }
 0x12e   :  { %v267_v5 = vpop.f32.mrf.mxu2 }
 0x12f   :  { %v317_v6 = vsel %vm313_vm6, %v267_v5, -1e+30  ;;  %v531_v5 = vld [vmem:[#allocation7 + $0x38] sm:$0xff] }
 0x130   :  { %v326_v7 = vsel %vm319_vm4, %v317_v6, -inf  ;;  %552 = vmatpush.msra.mxu3 %v531_v5 }
 0x131   :  { %327 = vmax.xlane.f32.xlu1 %v326_v7 }
 0x136   :  { %v287_v9 = vpop.f32.mrf.mxu3 }
 0x137   :  { %v318_v10 = vsel %vm314_vm7, %v287_v9, -1e+30  ;;  %v530_v9 = vld [vmem:[#allocation7 + $0x30] sm:$0xff] }
 0x138   :  { %v329_v11 = vsel %vm319_vm4, %v318_v10, -inf  ;;  %553 = vmatpush.msra.mxu3 %v530_v9 }
 0x139   :  { %330 = vmax.xlane.f32.xlu2 %v329_v11  ;;  %v529_v11 = vld [vmem:[#allocation7 + $0x28] sm:$0xff] }
 0x13a   :  { %554 = vmatpush.msra.mxu3 %v529_v11 }
 0x18e   :  { %v322_v12 = vpop.xlane.xlu2 %321 }
 0x18f   :  { %v332_v13 = vsub.f32 %v315_v63, %v322_v12 }
 0x191   :  { %v336_v14 = vmul.f32 1.442695, %v332_v13 }
 0x193   :  { %659 = vpow2.f32 %v336_v14 }
 0x196   :  { %v325_v15 = vpop.xlane.xlu0 %324 }
 0x197   :  { %v333_v17 = vsub.f32 %v316_v2, %v325_v15  ;;  %v528_v15 = vld [vmem:[#allocation7 + $0x20] sm:$0xff] }
 0x198   :  { %555 = vmatpush.msra.mxu3 %v528_v15 }
 0x199   :  { %v660_v18 = vpop.eup %659  ;;  %v338_v19 = vmul.f32 1.442695, %v333_v17 }
 0x19a   :  { %v344_v20 = vsel %vm319_vm4, %v660_v18, 0.0 }
 0x19b   :  { %661 = vpow2.f32 %v338_v19  ;;  %345 = vadd.xlane.f32.xlu2 %v344_v20 }
 0x1a1   :  { %v662_v21 = vpop.eup %661 }
 0x1a2   :  { %v347_v22 = vsel %vm319_vm4, %v662_v21, 0.0 }
 0x1a3   :  { %348 = vadd.xlane.f32.xlu2 %v347_v22 }
 0x1a4   :  { %v328_v23 = vpop.xlane.xlu1 %327 }
 0x1a5   :  { %v334_v26 = vsub.f32 %v317_v6, %v328_v23  ;;  %v525_v23 = vld [vmem:[#allocation7 + $0x8] sm:$0xff] }
 0x1a7   :  { %v340_v28 = vmul.f32 1.442695, %v334_v26 }
 0x1ac   :  { %v331_v24 = vpop.xlane.xlu2 %330 }
 0x1ad   :  { %v335_v25 = vsub.f32 %v318_v10, %v331_v24  ;;  %v524_v24 = vld [vmem:[#allocation7] sm:$0xff] }
 0x1af   :  { %v342_v27 = vmul.f32 1.442695, %v335_v25 }
 0x1b1   :  { %663 = vpow2.f32 %v342_v27 }
 0x1b2   :  { %665 = vpow2.f32 %v340_v28 }
 0x1b7   :  { %v664_v29 = vpop.eup %663 }
 0x1b8   :  { %v353_v30 = vsel %vm319_vm4, %v664_v29, 0.0  ;;  %v666_v31 = vpop.eup %665 }
 0x1b9   :  { %354 = vadd.xlane.f32.xlu2 %v353_v30  ;;  %v350_v32 = vsel %vm319_vm4, %v666_v31, 0.0 }
 0x1c1   :  { %351 = vadd.xlane.f32.xlu2 %v350_v32 }
 0x20e   :  { %v346_v33 = vpop.xlane.xlu2 %345 }
 0x20f   :  { %667 = vrcp.f32 %v346_v33 }
 0x215   :  { %v668_v34 = vpop.eup %667 }
 0x216   :  { %v349_v35 = vpop.xlane.xlu2 %348  ;;  %v360_v36 = vmul.f32 %v668_v34, %v660_v18  ;;  %v527_v18 = vld [vmem:[#allocation7 + $0x18] sm:$0xff] }
 0x217   :  { %669 = vrcp.f32 %v349_v35  ;;  %556 = vmatpush.msra.mxu3 %v527_v18 }
 0x218   :  { %641 = vmatmul.msk.f32.vlgmr.msrb.gmra.mxu3 %vm319_vm4, %v360_v36  ;;  %671 = vrcp.f32 %v80_v40 }
 0x21d   :  { %v670_v37 = vpop.eup %669 }
 0x21e   :  { %v361_v38 = vmul.f32 %v670_v37, %v662_v21  ;;  %v672_v41 = vpop.eup %671  ;;  %v526_v21 = vld [vmem:[#allocation7 + $0x10] sm:$0xff] }
 0x21f   :  { %496 = vperm.xlu2 %657, %v672_v41   ;;  %557 = vmatpush.msra.mxu3 %v526_v21 }
 0x220   :  { %642 = vmatmul.msk.f32.vlgmr.msra.gmra.mxu0 %vm319_vm4, %v361_v38 }
 0x221   :  { %558 = vmatpush.msra.mxu3 %v525_v23 }
 0x223   :  { %559 = vmatpush.msra.mxu3 %v524_v24 }
 0x22c   :  { %v355_v42 = vpop.xlane.xlu2 %354 }
 0x22d   :  { %673 = vrcp.f32 %v355_v42 }
 0x233   :  { %v674_v43 = vpop.eup %673 }
 0x234   :  { %v363_v44 = vmul.f32 %v674_v43, %v664_v29  ;;  %v352_v45 = vpop.xlane.xlu2 %351 }
 0x235   :  { %675 = vrcp.f32 %v352_v45 }
 0x236   :  { %644 = vmatmul.msk.f32.vlgmr.msra.gmra.mxu2 %vm319_vm4, %v363_v44 }
 0x23b   :  { %v676_v46 = vpop.eup %675 }
 0x23c   :  { %v362_v47 = vmul.f32 %v676_v46, %v666_v31 }
 0x23e   :  { %643 = vmatmul.msk.f32.vlgmr.msra.gmra.mxu1 %vm319_vm4, %v362_v47 }
 0x279   :  { %v497_v12 = vpop.permute.xlu2 %496 }
 0x27a   :  { %v498_v17 = vrot.slane %v497_v12, 1  ;;  %v500_v43 = vrot.slane %v497_v12, 3  ;;  %v499_v44 = vrot.slane %v497_v12, 2 }
 0x29b   :  { %v384_v52 = vpop.f32.mrf.mxu3 }
 0x29c   :  { %v456_v56 = vmax.f32 %v384_v52, 0.0 }
 0x29d   :  { %v407_v57 = vpop.f32.mrf.mxu0 }
 0x29e   :  { %v466_v60 = vsel %vm462_vm1, %v456_v56, 0.0  ;;  %v457_v62 = vmax.f32 %v407_v57, 0.0 }
 0x29f   :  { %v470_v63 = vrot.slane %v466_v60, 4 }
 0x2a0   :  { %v467_v1 = vsel %vm463_vm2, %v457_v62, 0.0 }
 0x2a1   :  { %v471_v2 = vadd.f32 %v470_v63, %v466_v60  ;;  %v476_v3 = vrot.slane %v467_v1, 4 }
 0x2a3   :  { %v472_v6 = vrot.slane %v471_v2, 2  ;;  %v477_v7 = vadd.f32 %v476_v3, %v467_v1  ;;  %v580_v3 = vsub.f32 0.0, %v579_v61 }
 0x2a5   :  { %v473_v10 = vadd.f32 %v472_v6, %v471_v2  ;;  %v478_v55 = vrot.slane %v477_v7, 2 }
 0x2a7   :  { %v479_v13 = vadd.f32 %v478_v55, %v477_v7  ;;  %v474_v14 = vrot.slane %v473_v10, 1 }
 0x2a9   :  { %v480_v58 = vrot.slane %v479_v13, 1  ;;  %v475_v20 = vadd.f32 %v474_v14, %v473_v10 }
 0x2ab   :  { %v481_v19 = vadd.f32 %v480_v58, %v479_v13  ;;  %v505_v25 = vmul.f32 %v497_v12, %v475_v20 }
 0x2ad   :  { %v506_v22 = vmul.f32 %v498_v17, %v481_v19 }
 0x2af   :  { %v513_v26 = vrot.slane %v506_v22, 7 }
 0x2b1   :  { %v515_v27 = vsel %vm514_vm9, %v513_v26, %v505_v25 }
 0x2b9   :  { %v453_v28 = vpop.f32.mrf.mxu2 }
 0x2ba   :  { %v459_v29 = vmax.f32 %v453_v28, 0.0 }
 0x2bb   :  { %v430_v30 = vpop.f32.mrf.mxu1 }
 0x2bc   :  { %v469_v31 = vsel %vm465_vm10, %v459_v29, 0.0  ;;  %v458_v32 = vmax.f32 %v430_v30, 0.0 }
 0x2bd   :  { %v488_v33 = vrot.slane %v469_v31, 4 }
 0x2be   :  { %v468_v34 = vsel %vm464_vm11, %v458_v32, 0.0 }
 0x2bf   :  { %v489_v35 = vadd.f32 %v488_v33, %v469_v31  ;;  %v482_v36 = vrot.slane %v468_v34, 4 }
 0x2c1   :  { %v490_v37 = vrot.slane %v489_v35, 2  ;;  %v483_v38 = vadd.f32 %v482_v36, %v468_v34 }
 0x2c3   :  { %v491_v39 = vadd.f32 %v490_v37, %v489_v35  ;;  %v484_v40 = vrot.slane %v483_v38, 2 }
 0x2c5   :  { %v492_v41 = vrot.slane %v491_v39, 1  ;;  %v485_v42 = vadd.f32 %v484_v40, %v483_v38 }
 0x2c7   :  { %v493_v45 = vadd.f32 %v492_v41, %v491_v39  ;;  %v486_v8 = vrot.slane %v485_v42, 1 }
 0x2c9   :  { %v487_v46 = vadd.f32 %v486_v8, %v485_v42  ;;  %v508_v47 = vmul.f32 %v500_v43, %v493_v45 }
 0x2cb   :  { %v507_v48 = vmul.f32 %v499_v44, %v487_v46  ;;  %v519_v54 = vrot.slane %v508_v47, 5 }
 0x2cd   :  { %v516_v16 = vrot.slane %v507_v48, 6 }
 0x2cf   :  { %v518_v4 = vsel %vm517_vm12, %v516_v16, %v515_v27 }
 0x2d0   :  { %v521_v49 = vsel %vm520_vm13, %v519_v54, %v518_v4 }
 0x2d1   :  { %560 = vmatmul.f32.vlgmr.msra.gmra.mxu3 %v521_v49  ;;  %523 = vst [vmem:[#allocation8] sm:$0xf] %v521_v49 }
 0x2d2   :  { %605 = dma.vmem_to_hbm [thread:$0]  %s601_s30, 64, %s603_s28, [#allocation4]  }
 0x354   :  { %v561_v51 = vpop.f32.mrf.mxu3 }
 0x355   :  { %v562_v52 = vadd.f32 %v658_v50, %v561_v51 }
 0x357   :  { %v565_v53 = vsel %vm564_vm14, %v562_v52, -1e+30 }
 0x358   :  { %v567_v56 = vsel %vm566_vm15, %v565_v53, -inf }
 0x359   :  { %568 = vmax.xlane.f32.xlu0 %v567_v56 }
 0x3cc   :  { %v569_v57 = vpop.xlane.xlu0 %568 }
 0x3cd   :  { %v570_v59 = vsub.f32 %v565_v53, %v569_v57 }
 0x3cf   :  { %v571_v60 = vmul.f32 1.442695, %v570_v59 }
 0x3d1   :  { %677 = vpow2.f32 %v571_v60 }
 0x3d7   :  { %v678_v62 = vpop.eup %677 }
 0x3d8   :  { %v573_v63 = vsel %vm566_vm15, %v678_v62, 0.0 }
 0x3d9   :  { %574 = vadd.xlane.f32.xlu1 %v573_v63 }
 0x44c   :  { %v575_v0 = vpop.xlane.xlu1 %574 }
 0x44d   :  { %679 = vlog2.f32 %v575_v0 }
 0x453   :  { %v680_v1 = vpop.eup %679 }
 0x454   :  { %v577_v2 = vmul.f32 0.6931472, %v680_v1 }
 0x456   :  { %v578_v5 = vsub.f32 %v570_v59, %v577_v2 }
 0x458   :  { %v581_v6 = vmul.f32 %v580_v3, %v578_v5 }
 0x45a   :  { %v582_v7 = vsel %vm566_vm15, %v581_v6, 0.0 }
 0x45b   :  { %583 = vadd.xlane.f32.xlu0 %v582_v7 }
 0x4ce   :  { %v584_v9 = vpop.xlane.xlu0 %583 }
 0x4cf   :  { %v585_v10 = vsel %vm566_vm15, %v584_v9, 0.0 }
 0x4d0   :  { %v586_v55 = vrot.slane %v585_v10, 4 }
 0x4d2   :  { %v587_v11 = vadd.f32 %v586_v55, %v585_v10 }
 0x4d4   :  { %v588_v12 = vrot.slane %v587_v11, 2 }
 0x4d6   :  { %v589_v13 = vadd.f32 %v588_v12, %v587_v11 }
 0x4d8   :  { %v590_v14 = vrot.slane %v589_v13, 1 }
 0x4da   :  { %v591_v15 = vadd.f32 %v590_v14, %v589_v13 }
 0x4dc   :  { %v592_v58 = vmul.f32 0.25, %v591_v15 }
 0x4de   :  { %594 = vst.msk [vmem:[#allocation9] sm:$0x1] %vm593_vm0, %v592_v58 }
 0x4df   :  { %616 = dma.vmem_to_hbm [thread:$0]  %s612_s9, 16, %s614_s12, [#allocation10]  }
 0x4e0   :  { %805 = dma.done.wait [#allocation4], 64  }
 0x4e1   :  { %806 = vsyncadd [#allocation4], 4294967232 }
 0x4e2   :  { %807 = dma.done.wait [#allocation10], 16  }
 0x4e3   :  { %808 = vsyncadd [#allocation10], 4294967280 }
 0x4e4   :  { %625 = vsyncpa [#allocation3], 1 }
 0x4e5   :  { %626 = vsyncpa [#allocation6], 1 }
 0x4e6   :  { %627 = vsyncpa [#allocation4], 1 }
 0x4e7   :  { %628 = vsyncpa [#allocation10], 1 }

</bundles_post_ra>
